<compile_context>
chip_gen: v6e
topology: v6e:2x2x1
jax: 0.10.0
libtpu: 0.0.40
codegen_flags: <defaults>
</compile_context>

<pallas_src>
import functools

import jax
import jax.numpy as jnp
from jax.experimental import pallas as pl
from jax.experimental.pallas import tpu as pltpu


def _round_up(x: int, m: int) -> int:
    return (x + m - 1) // m * m


# --------------------------------- kernels ----------------------------------

def _logreg_kernel_dense(x_ref, w_ref, b_ref, o_ref):
    """Fused linear + sigmoid with a lane-dense epilogue.

    x_ref: (tb, F) f32 VMEM   batch tile
    w_ref: (1, F)  f32 VMEM   nn.Linear weight layout (lane-dense, no transpose)
    b_ref: (1, 1)  f32 SMEM   bias scalar
    o_ref: (tb,)   f32 VMEM   lane-dense output block
    """
    p = x_ref[...] * w_ref[...]                   # VPU, broadcast over rows
    y = jnp.sum(p, axis=1) + b_ref[0, 0]          # XLU lane reduce -> dense (tb,)
    o_ref[...] = 1.0 / (1.0 + jnp.exp(-y))        # exact sigmoid (EUP exp + div)


def _logreg_kernel_col(x_ref, w_ref, b_ref, o_ref):
    """Conservative fallback: identical math, (tb, 1) output block."""
    y = jnp.sum(x_ref[...] * w_ref[...], axis=1, keepdims=True) + b_ref[0, 0]
    o_ref[...] = 1.0 / (1.0 + jnp.exp(-y))


# --------------------------------- wrappers ---------------------------------

def _in_specs(tb: int, F: int):
    return [
        pl.BlockSpec((tb, F), lambda i: (i, 0)),              # x batch tile
        pl.BlockSpec((1, F), lambda i: (0, 0)),                # weight (resident)
        pl.BlockSpec(memory_space=pltpu.MemorySpace.SMEM),     # bias scalar
    ]


@functools.partial(jax.jit, static_argnames=("tb",))
def _forward_dense(x, w, b, *, tb):
    B, F = x.shape
    out = pl.pallas_call(
        _logreg_kernel_dense,
        out_shape=jax.ShapeDtypeStruct((B,), jnp.float32),
        grid_spec=pltpu.PrefetchScalarGridSpec(
            num_scalar_prefetch=0,
            grid=(pl.cdiv(B, tb),),
            in_specs=_in_specs(tb, F),
            out_specs=pl.BlockSpec((tb,), lambda i: (i,)),
        ),
        compiler_params=pltpu.CompilerParams(
            dimension_semantics=("parallel",)),
    )(x, w, b)
    return out[:, None]                                        # (B, 1)


@functools.partial(jax.jit, static_argnames=("tb",))
def _forward_col(x, w, b, *, tb):
    B, F = x.shape
    return pl.pallas_call(
        _logreg_kernel_col,
        out_shape=jax.ShapeDtypeStruct((B, 1), jnp.float32),
        grid_spec=pltpu.PrefetchScalarGridSpec(
            num_scalar_prefetch=0,
            grid=(pl.cdiv(B, tb),),
            in_specs=_in_specs(tb, F),
            out_specs=pl.BlockSpec((tb, 1), lambda i: (i, 0)),
        ),
        compiler_params=pltpu.CompilerParams(
            dimension_semantics=("parallel",)),
    )(x, w, b)


def _choose_tile(B: int, block_b: int) -> int:
    """Pick the batch-tile size.

    True per-buffer VMEM cost of a (tb, F=30) f32 block is tb * 128 * 4 bytes
    (lane padding to 128), double-buffered by the pipeline.  block_b is
    clamped to 8192 (4 MiB/buffer, 8 MiB double-buffered) so it stays well
    inside every generation's scoped-VMEM default (v5e 16 MiB, v6e 32 MiB,
    v7x 32 MiB of 64 MiB physical) without a vmem_limit override.
    """
    block_b = min(max(block_b, 128), 8192)
    if B > block_b:
        return _round_up(block_b, 128)
    if B >= 256:
        # Split into (at least) two lane-aligned tiles so v7x's two
        # TensorCores can each take part of the "parallel" batch axis.
        return _round_up(pl.cdiv(B, 2), 128)
    return B  # single block == full array dims (small-batch path)


_DENSE_OK = None  # tri-state: None = untried, True/False after first compile


def logistic_regression(x, weight, bias, *, block_b=4096, xla_batch_threshold=64):
    """sigmoid(x @ weight.T + bias).  x: (B, F), weight: (1, F), bias: (1,) -> (B, 1)."""
    global _DENSE_OK
    B, F = x.shape
    x = jnp.asarray(x, jnp.float32)
    w = jnp.asarray(weight, jnp.float32).reshape(1, F)
    b = jnp.asarray(bias, jnp.float32).reshape(1, 1)

    if B <= xla_batch_threshold:
        # A single tiny tile is pure kernel-launch + one-DMA overhead; the
        # fused XLA op is strictly better at this size.
        return jax.nn.sigmoid(x @ w.T + b)

    tb = _choose_tile(B, block_b)

    if _DENSE_OK is not False:
        try:
            out = _forward_dense(x, w, b, tb=tb)
            _DENSE_OK = True
            return out
        except Exception:
            if _DENSE_OK:
                raise            # dense path was known-good; real runtime error
            _DENSE_OK = False    # lowering rejected rank-1 path; use fallback
    return _forward_col(x, w, b, tb=tb)


def reference(x, weight, bias):
    # f32 VPU reference (avoids default-precision bf16 MXU matmul on TPU).
    logits = jnp.sum(x * weight, axis=-1, keepdims=True) + bias
    return jax.nn.sigmoid(logits)


# ----------------------------------- main -----------------------------------

if __name__ == "__main__":
    key = jax.random.PRNGKey(0)
    kx1, kx2, kx3, kw, kb = jax.random.split(key, 5)

    F = 30                                    # breast-cancer feature count
    bound = 1.0 / float(F) ** 0.5             # nn.Linear default init range
    weight = jax.random.uniform(kw, (1, F), minval=-bound, maxval=bound,
                                dtype=jnp.float32)
    bias = jax.random.uniform(kb, (1,), minval=-bound, maxval=bound,
                              dtype=jnp.float32)

    def check(y, y_ref, name):
        assert y.shape == y_ref.shape, (name, y.shape, y_ref.shape)
        err = float(jnp.max(jnp.abs(y - y_ref)))
        assert err < 1e-5, f"{name}: max abs err {err}"

    # 1) Tiny spec-sized batch forced through the Pallas path (single block).
    x1 = jax.random.normal(kx1, (8, F), dtype=jnp.float32)
    y1 = jax.block_until_ready(
        logistic_regression(x1, weight, bias, xla_batch_threshold=0))
    check(y1, reference(x1, weight, bias), "B=8 pallas")

    # 2) Same tiny batch through the default entry (XLA short-circuit).
    y1b = jax.block_until_ready(logistic_regression(x1, weight, bias))
    check(y1b, reference(x1, weight, bias), "B=8 xla")

    # 3) Ragged multi-tile batch (grid of 2, last block masked on write).
    x2 = jax.random.normal(kx2, (300, F), dtype=jnp.float32)
    y2 = jax.block_until_ready(logistic_regression(x2, weight, bias))
    check(y2, reference(x2, weight, bias), "B=300")

    # 4) Larger even batch (two full 512-row tiles, no padding anywhere).
    x3 = jax.random.normal(kx3, (1024, F), dtype=jnp.float32)
    y3 = jax.block_until_ready(logistic_regression(x3, weight, bias))
    check(y3, reference(x3, weight, bias), "B=1024")

    print("KERNEL_OK")
</pallas_src>

<mosaic_0001>
module attributes {stable_mosaic.version = 11 : i64} {
  func.func @_logreg_kernel_col(%arg0: i32, %arg1: memref<8x30xf32, #tpu.memory_space<vmem>>, %arg2: memref<1x30xf32, #tpu.memory_space<vmem>>, %arg3: memref<1x1xf32, #tpu.memory_space<smem>>, %arg4: memref<8x1xf32, #tpu.memory_space<vmem>>) attributes {dimension_semantics = [#tpu.dimension_semantics<parallel>], iteration_bounds = array<i64: 1>, scalar_prefetch = 0 : i64, scratch_operands = 0 : i64, tpu.core_type = #tpu.core_type<tc>, window_params = [{transform_indices = @transform_0, window_bounds = array<i64: 8, 30>}, {pipeline_mode = #tpu.pipeline_mode<synchronous>, transform_indices = @transform_1, window_bounds = array<i64: 1, 30>}, {transform_indices = @transform_2, window_bounds = array<i64: 1, 1>}, {transform_indices = @transform_3, window_bounds = array<i64: 8, 1>}]} {
    %c0 = arith.constant 0 : index
    %c0_0 = arith.constant 0 : index
    %0 = vector.load %arg1[%c0, %c0_0] : memref<8x30xf32, #tpu.memory_space<vmem>>, vector<8x30xf32>
    %c0_1 = arith.constant 0 : index
    %c0_2 = arith.constant 0 : index
    %1 = vector.load %arg2[%c0_1, %c0_2] : memref<1x30xf32, #tpu.memory_space<vmem>>, vector<1x30xf32>
    %2 = vector.broadcast %1 : vector<1x30xf32> to vector<8x30xf32>
    %3 = arith.mulf %0, %2 : vector<8x30xf32>
    %cst = arith.constant dense<0.000000e+00> : vector<8xf32>
    %4 = vector.multi_reduction <add>, %3, %cst [1] : vector<8x30xf32> to vector<8xf32>
    %5 = vector.shape_cast %4 : vector<8xf32> to vector<8x1xf32>
    %c0_3 = arith.constant 0 : index
    %c0_4 = arith.constant 0 : index
    %6 = memref.load %arg3[%c0_3, %c0_4] : memref<1x1xf32, #tpu.memory_space<smem>>
    %7 = vector.broadcast %6 : f32 to vector<8x1xf32>
    %8 = arith.addf %5, %7 : vector<8x1xf32>
    %cst_5 = arith.constant 0.000000e+00 : f32
    %9 = vector.broadcast %cst_5 : f32 to vector<8x1xf32>
    %10 = arith.subf %9, %8 : vector<8x1xf32>
    %11 = math.exp %10 : vector<8x1xf32>
    %cst_6 = arith.constant 1.000000e+00 : f32
    %12 = vector.broadcast %cst_6 : f32 to vector<8x1xf32>
    %13 = arith.addf %12, %11 : vector<8x1xf32>
    %cst_7 = arith.constant 1.000000e+00 : f32
    %14 = vector.broadcast %cst_7 : f32 to vector<8x1xf32>
    %15 = arith.divf %14, %13 : vector<8x1xf32>
    %c0_8 = arith.constant 0 : index
    %c0_9 = arith.constant 0 : index
    %16 = vector.load %arg4[%c0_8, %c0_9] : memref<8x1xf32, #tpu.memory_space<vmem>>, vector<8x1xf32>
    tpu.vector_store %arg4[%c0_8, %c0_9], %15 {strides = array<i32>} : memref<8x1xf32, #tpu.memory_space<vmem>>, vector<8x1xf32>,
    return
  }
  func.func @transform_0(%arg0: i32) -> (i32, i32) {
    %c0_i32 = arith.constant 0 : i32
    %c0_i32_0 = arith.constant 0 : i32
    return %arg0, %c0_i32 : i32, i32
  }
  func.func @transform_1(%arg0: i32) -> (i32, i32) {
    %c0_i32 = arith.constant 0 : i32
    %c0_i32_0 = arith.constant 0 : i32
    %c0_i32_1 = arith.constant 0 : i32
    return %c0_i32, %c0_i32_0 : i32, i32
  }
  func.func @transform_2(%arg0: i32) -> (i32, i32) {
    %c0_i32 = arith.constant 0 : i32
    %c0_i32_0 = arith.constant 0 : i32
    %c0_i32_1 = arith.constant 0 : i32
    return %c0_i32, %c0_i32_0 : i32, i32
  }
  func.func @transform_3(%arg0: i32) -> (i32, i32) {
    %c0_i32 = arith.constant 0 : i32
    %c0_i32_0 = arith.constant 0 : i32
    return %arg0, %c0_i32 : i32, i32
  }
}

</mosaic_0001>

<bundles_post_ra>
// kernel: _forward_col.1
= control target key start
LH: loop header
LB: loop body
LE: loop exit
PB: predicated region body
PF: predicated region fallthrough
CT: control target
= control target key end

     0   :  { %9 = vsyncpa [#allocation4], 0  ;;  %s84_s12 = smov [#allocation3]   ;;  %s117_s0 = inlined_call_operand.hbm [shape: f32[8,30], index: 0, kind: input, shape index: {}]   ;;  %s118_s1 = inlined_call_operand.vmem [shape: f32[1,30], index: 1, kind: input, shape index: {}]   ;;  %s119_s2 = inlined_call_operand.<no memory space> [shape: f32[1,1], index: 2, kind: input, shape index: {}]   ;;  %s120_s3 = inlined_call_operand.vmem [shape: f32[8,1], index: 3, kind: output, shape index: {}]  }
   0x1   :  { %s16_s13 = sshll.u32 %s84_s12, 4  ;;  %s17_s13 = int_to_ptr.vmem [resolvable:$true] %s16_s13 }
   0x2   :  { %s70_s14 = scalar_lea.vmem %s17_s13, 128  ;;  %p75_p1 = scmp.lt.s32.totalorder %s17_s13, %s17_s13 }
   0x3   :  { %p71_p0 = scmp.ne.s32.totalorder %s17_s13, %s70_s14  ;;  %p76_p2 = scmp.lt.s32.totalorder %s70_s14, %s70_s14 }
   0x5   :  { %p77_p3 = por %p76_p2, %p75_p1 }
   0x7   :  { %p78_p4 = pnand %p77_p3, %p71_p0 }
   0x9   :  { %81 = shalt.err (!%p78_p4)
}
   0xa   :  { %19 = dma.hbm_to_vmem [thread:$0]  %s117_s0, 128, %s17_s13, [#allocation4]  }
   0xb   :  { %82 = dma.done.wait [#allocation4], 128  }
   0xc   :  { %83 = vsyncadd [#allocation4], 4294967168  ;;  %v27_v0 = vld [vmem:[#allocation3] sm:$0xff]  ;;  %vm36_vm0 = vcmask 244736   ;;  %v41_v4 = vstv %s119_s2  ;;  %vm49_vm1 = vcmask 7168  }
   0xd   :  { %v56_v1 = vld [vmem:[%s118_s1] ss:$0 sm:$0xff] }
   0xe   :  { %v35_v2 = vmul.f32 %v56_v1, %v27_v0 }
  0x10   :  { %v37_v3 = vsel %vm36_vm0, %v35_v2, 0.0 }
  0x11   :  { %38 = vadd.xlane.f32.xlu0 %v37_v3 }
  0x9a   :  { %v39_v5 = vpop.xlane.xlu0 %38 }
  0x9b   :  { %v42_v6 = vadd.f32 %v41_v4, %v39_v5 }
  0x9d   :  { %v43_v7 = vsub.f32 0.0, %v42_v6 }
  0x9f   :  { %v44_v8 = vmul.f32 1.442695, %v43_v7 }
  0xa1   :  { %58 = vpow2.f32 %v44_v8 }
  0xae   :  { %v59_v9 = vpop.eup %58 }
  0xaf   :  { %v46_v10 = vadd.f32 1.0, %v59_v9 }
  0xb1   :  { %60 = vrcp.f32 %v46_v10 }
  0xbe   :  { %v61_v11 = vpop.eup %60 }
  0xbf   :  { %50 = vst.msk [vmem:[%s120_s3] sm:$0xff] %vm49_vm1, %v61_v11 }
  0xc0   :  { %55 = vsyncpa [#allocation4], 1 }

</bundles_post_ra>
